<compile_context>
chip_gen: v6e
topology: v6e:2x2x1
jax: 0.10.0
libtpu: 0.0.40
codegen_flags: <defaults>
</compile_context>

<pallas_src>
import functools

import jax
import jax.numpy as jnp
from jax.experimental import pallas as pl
from jax.experimental.pallas import tpu as pltpu

ROW_TILE = 512  # rows of B*Q per grid step when B*Q is large (multiple of 8 and 128)


def _ordering_head_kernel(x_ref, p_ref, o_ref, *, t, c):
    # x_ref : (rows, T*C)  lane-packed activations for this row tile
    # p_ref : (C+3, C)     packed params: rows [0,C)=w1, C=b1, C+1=w2, C+2=b2 (replicated)
    # o_ref : (1, rows)    lane-dense output row
    x = x_ref[...]

    # ---- max over T (per row, across the packed lanes) ----------------------
    if t == 1:
        m = x                                               # (rows, C)
    elif (t & (t - 1)) == 0:
        # Power-of-two T: circular roll+max folds over the T*C lane extent.
        # After the folds, lanes [0, C) hold the max over all T chunks.
        v = x
        span = t * c
        while span > c:
            span //= 2
            v = jnp.maximum(v, pltpu.roll(v, shift=span, axis=1))
        m = v[:, :c]                                        # (rows, C)
    else:
        # General fallback: elementwise max over static lane chunks.
        m = x[:, :c]
        for ti in range(1, t):
            m = jnp.maximum(m, x[:, ti * c:(ti + 1) * c])

    # ---- MLP: Linear(C,C) + ReLU, then Linear(C,1) computed transposed ------
    w1 = p_ref[0:c, :]                  # (C, C)
    b1 = p_ref[c:c + 1, :]              # (1, C)
    w2 = p_ref[c + 1:c + 2, :]          # (1, C)  Linear(C,1) weight as a row
    b2 = p_ref[c + 2:c + 3, :][:, :1]   # (1, 1)

    h = jnp.maximum(
        jnp.dot(m, w1, preferred_element_type=jnp.float32) + b1, 0.0)  # (rows, C)

    # w2 (1,C) contracted with h (rows,C) over C -> lane-dense (1, rows) row.
    y = jax.lax.dot_general(
        w2, h, (((1,), (1,)), ((), ())), preferred_element_type=jnp.float32)
    o_ref[...] = (y + b2).astype(o_ref.dtype)


def ordering_head_forward(params, btn_dec, *, num_query):
    """params (x @ W convention): w1 (C,C), b1 (C,), w2 (C,1), b2 (1,).
    btn_dec: (B, Q*T, C) float32.  Returns (B, Q) float32."""
    b, qt, c = btn_dec.shape
    q = num_query
    assert qt % q == 0, "num_query must divide the Q*T axis of btn_dec"
    t = qt // q
    bq = b * q

    # 'b (q t) c -> (b q) (t c)' is a contiguous reshape: lane-packed rows.
    x = btn_dec.reshape(bq, t * c)

    # Pack all parameters into a single VMEM operand (one DMA instead of four).
    packed = jnp.concatenate(
        [
            params["w1"].astype(jnp.float32),                               # (C, C)
            params["b1"].reshape(1, c).astype(jnp.float32),                 # (1, C)
            params["w2"].reshape(1, c).astype(jnp.float32),                 # (1, C)
            jnp.broadcast_to(params["b2"].reshape(1, 1), (1, c)).astype(jnp.float32),
        ],
        axis=0,
    )                                                                       # (C+3, C)

    # Row tile: whole thing if small, else 512-row tiles (multiple of 8 & 128).
    rt = bq if bq <= ROW_TILE else ROW_TILE
    grid = (pl.cdiv(bq, rt),)

    out = pl.pallas_call(
        functools.partial(_ordering_head_kernel, t=t, c=c),
        out_shape=jax.ShapeDtypeStruct((1, bq), jnp.float32),
        grid=grid,
        in_specs=[
            pl.BlockSpec((rt, t * c), lambda i: (i, 0)),     # activations, tiled on rows
            pl.BlockSpec((c + 3, c), lambda i: (0, 0)),      # packed params, resident
        ],
        out_specs=pl.BlockSpec((1, rt), lambda i: (0, i)),   # lane-dense output row
        compiler_params=pltpu.CompilerParams(
            dimension_semantics=("parallel",),               # shard rows across TCs (v7x)
            vmem_limit_bytes=32 * 1024 * 1024,
        ),
    )(x, packed)

    # '(1, b q) -> b q'
    return out.reshape(b, q)


def ordering_head_ref(params, btn_dec, *, num_query):
    """Pure-JAX reference (mirrors the PyTorch module exactly)."""
    b, qt, c = btn_dec.shape
    t = qt // num_query
    x = btn_dec.reshape(b * num_query, t, c)
    m = jnp.max(x, axis=1)
    h = jnp.maximum(m @ params["w1"] + params["b1"], 0.0)
    y = h @ params["w2"] + params["b2"]
    return y.reshape(b, num_query)


if __name__ == "__main__":
    key = jax.random.PRNGKey(0)
    B, T, C = 2, 4, 32            # btn_features = 32
    num_query = 3

    k1, k2, k3, k4, kx, ky = jax.random.split(key, 6)
    params = {
        "w1": jax.random.normal(k1, (C, C), jnp.float32) * 0.05,
        "b1": jax.random.normal(k2, (C,), jnp.float32) * 0.05,
        "w2": jax.random.normal(k3, (C, 1), jnp.float32) * 0.05,
        "b2": jax.random.normal(k4, (1,), jnp.float32) * 0.05,
    }
    btn_dec = jax.random.normal(kx, (B, num_query * T, C), jnp.float32)

    fwd = jax.jit(functools.partial(ordering_head_forward, num_query=num_query))
    out = fwd(params, btn_dec)
    jax.block_until_ready(out)

    ref = ordering_head_ref(params, btn_dec, num_query=num_query)
    assert out.shape == (B, num_query)
    assert bool(jnp.all(jnp.isfinite(out)))
    assert bool(jnp.allclose(out, ref, atol=1e-5, rtol=1e-5))

    # Larger shape to exercise the parallel row grid (B*Q = 768 > ROW_TILE -> 2 steps).
    B2, Q2 = 48, 16
    btn_dec2 = jax.random.normal(ky, (B2, Q2 * T, C), jnp.float32)
    fwd2 = jax.jit(functools.partial(ordering_head_forward, num_query=Q2))
    out2 = fwd2(params, btn_dec2)
    jax.block_until_ready(out2)
    ref2 = ordering_head_ref(params, btn_dec2, num_query=Q2)
    assert out2.shape == (B2, Q2)
    assert bool(jnp.allclose(out2, ref2, atol=1e-5, rtol=1e-5))

    print("KERNEL_OK")
</pallas_src>

<mosaic_0001>
module attributes {stable_mosaic.version = 11 : i64} {
  func.func @_ordering_head_kernel(%arg0: i32, %arg1: memref<6x128xf32, #tpu.memory_space<vmem>>, %arg2: memref<35x32xf32, #tpu.memory_space<vmem>>, %arg3: memref<1x6xf32, #tpu.memory_space<vmem>>) attributes {dimension_semantics = [#tpu.dimension_semantics<parallel>], iteration_bounds = array<i64: 1>, scalar_prefetch = 0 : i64, scratch_operands = 0 : i64, tpu.core_type = #tpu.core_type<tc>, window_params = [{transform_indices = @transform_0, window_bounds = array<i64: 6, 128>}, {pipeline_mode = #tpu.pipeline_mode<synchronous>, transform_indices = @transform_1, window_bounds = array<i64: 35, 32>}, {transform_indices = @transform_2, window_bounds = array<i64: 1, 6>}]} {
    %c0 = arith.constant 0 : index
    %c0_0 = arith.constant 0 : index
    %0 = vector.load %arg1[%c0, %c0_0] : memref<6x128xf32, #tpu.memory_space<vmem>>, vector<6x128xf32>
    %c64_i32 = arith.constant 64 : i32
    %1 = tpu.dynamic_rotate %0 by %c64_i32 dim 1 : vector<6x128xf32>, i32 -> vector<6x128xf32>
    %2 = arith.maximumf %0, %1 : vector<6x128xf32>
    %c32_i32 = arith.constant 32 : i32
    %3 = tpu.dynamic_rotate %2 by %c32_i32 dim 1 : vector<6x128xf32>, i32 -> vector<6x128xf32>
    %4 = arith.maximumf %2, %3 : vector<6x128xf32>
    %5 = vector.extract_strided_slice %4 {offsets = [0, 0], sizes = [6, 32], strides = [1, 1]} : vector<6x128xf32> to vector<6x32xf32>
    %c0_1 = arith.constant 0 : index
    %c0_2 = arith.constant 0 : index
    %6 = vector.load %arg2[%c0_1, %c0_2] : memref<35x32xf32, #tpu.memory_space<vmem>>, vector<32x32xf32>
    %c32 = arith.constant 32 : index
    %c0_3 = arith.constant 0 : index
    %7 = vector.load %arg2[%c32, %c0_3] : memref<35x32xf32, #tpu.memory_space<vmem>>, vector<1x32xf32>
    %c33 = arith.constant 33 : index
    %c0_4 = arith.constant 0 : index
    %8 = vector.load %arg2[%c33, %c0_4] : memref<35x32xf32, #tpu.memory_space<vmem>>, vector<1x32xf32>
    %c34 = arith.constant 34 : index
    %c0_5 = arith.constant 0 : index
    %9 = vector.load %arg2[%c34, %c0_5] : memref<35x32xf32, #tpu.memory_space<vmem>>, vector<1x32xf32>
    %10 = vector.extract_strided_slice %9 {offsets = [0, 0], sizes = [1, 1], strides = [1, 1]} : vector<1x32xf32> to vector<1x1xf32>
    %cst = arith.constant dense<0.000000e+00> : vector<6x32xf32>
    %11 = tpu.matmul %5, %6, %cst {dimension_numbers = #tpu.dot_dimension_numbers<[1], [0], [0], [1], [0, 0, 1, 1], [], []>} : vector<6x32xf32>, vector<32x32xf32>, vector<6x32xf32> -> vector<6x32xf32>
    %12 = vector.broadcast %7 : vector<1x32xf32> to vector<6x32xf32>
    %13 = arith.addf %11, %12 : vector<6x32xf32>
    %cst_6 = arith.constant 0.000000e+00 : f32
    %14 = vector.broadcast %cst_6 : f32 to vector<6x32xf32>
    %15 = arith.maximumf %13, %14 : vector<6x32xf32>
    %cst_7 = arith.constant dense<0.000000e+00> : vector<1x6xf32>
    %16 = tpu.matmul %8, %15, %cst_7 {dimension_numbers = #tpu.dot_dimension_numbers<[1], [1], [0], [0], [0, 0, 1, 0], [], []>} : vector<1x32xf32>, vector<6x32xf32>, vector<1x6xf32> -> vector<1x6xf32>
    %17 = vector.broadcast %10 : vector<1x1xf32> to vector<1x6xf32>
    %18 = arith.addf %16, %17 : vector<1x6xf32>
    %c0_8 = arith.constant 0 : index
    %c0_9 = arith.constant 0 : index
    %19 = vector.load %arg3[%c0_8, %c0_9] : memref<1x6xf32, #tpu.memory_space<vmem>>, vector<1x6xf32>
    tpu.vector_store %arg3[%c0_8, %c0_9], %18 {strides = array<i32>} : memref<1x6xf32, #tpu.memory_space<vmem>>, vector<1x6xf32>,
    return
  }
  func.func @transform_0(%arg0: i32) -> (i32, i32) {
    %c0_i32 = arith.constant 0 : i32
    %c0_i32_0 = arith.constant 0 : i32
    return %arg0, %c0_i32 : i32, i32
  }
  func.func @transform_1(%arg0: i32) -> (i32, i32) {
    %c0_i32 = arith.constant 0 : i32
    %c0_i32_0 = arith.constant 0 : i32
    %c0_i32_1 = arith.constant 0 : i32
    return %c0_i32, %c0_i32_0 : i32, i32
  }
  func.func @transform_2(%arg0: i32) -> (i32, i32) {
    %c0_i32 = arith.constant 0 : i32
    %c0_i32_0 = arith.constant 0 : i32
    return %c0_i32, %arg0 : i32, i32
  }
}

</mosaic_0001>

<bundles_post_ra>
// kernel: ordering_head_forward.1
= control target key start
LH: loop header
LB: loop body
LE: loop exit
PB: predicated region body
PF: predicated region fallthrough
CT: control target
= control target key end

     0   :  { %v225_v1 = vmov 0.0   ;;  %s226_s15 = smov 64   ;;  %vm227_vm0 = vmmov 0   ;;  %s228_s19 = smov 32   ;;  %vm29_vm1 = vcmask 261120   ;;  %v229_v11 = vmov 0   ;;  %s272_s0 = inlined_call_operand.vmem [shape: f32[6,128], index: 0, kind: input, shape index: {}]   ;;  %s273_s1 = inlined_call_operand.vmem [shape: f32[35,32], index: 1, kind: input, shape index: {}]   ;;  %s274_s2 = inlined_call_operand.vmem [shape: f32[1,6], index: 2, kind: output, shape index: {}]  }
   0x1   :  { %v11_v0 = vld [vmem:[%s272_s0] sm:$0x3f]  ;;  %202 = vmatprep.subr.mxu0 %v225_v1  ;;  %v21_v2 = vld [vmem:[%s273_s1 + $0x18] sm:$0xff]  ;;  %v20_v3 = vld [vmem:[%s273_s1 + $0x10] sm:$0xff]  ;;  %213 = vmatprep.subr.mxu1 %v225_v1  ;;  %vm185_vm2 = vcmask 40960  }
   0x2   :  { %12 = vrot.lane.b32.xlu0 %v11_v0, %s226_s15  ;;  %203 = vmatpush3.msra.mxu0 %v21_v2  ;;  %v19_v4 = vld [vmem:[%s273_s1 + $0x8] sm:$0xff]  ;;  %v18_v5 = vld [vmem:[%s273_s1] sm:$0xff] }
   0x3   :  { %204 = vmatprep.subr.mxu0 %v225_v1  ;;  %210 = vmatprep.mubr.msk.f32.mxu0 %vm227_vm0, %v225_v1  ;;  %v24_v10 = vld [vmem:[%s273_s1 + $0x22] sm:$0x1]  ;;  %v191_v12 = vld [vmem:[%s273_s1 + $0x20] ss:$0 sm:$0xff]  ;;  %v23_v17 = vld [vmem:[%s273_s1 + $0x21] sm:$0x1] }
   0x4   :  { %205 = vmatpush3.msra.mxu0 %v20_v3  ;;  %215 = vmatprep.mubr.msk.f32.mxu1 %vm227_vm0, %v225_v1 }
   0x5   :  { %206 = vmatprep.subr.mxu0 %v225_v1  ;;  %223 = vset.pattern.permute.xlu1 %v229_v11 }
   0x6   :  { %207 = vmatpush3.msra.mxu0 %v19_v4  ;;  %224 = vset.pattern.permute.xlu0 %v229_v11 }
   0x7   :  { %208 = vmatprep.subr.mxu0 %v225_v1  ;;  %106 = vperm.xlu1 %223, %v24_v10  }
   0x8   :  { %209 = vmatpush3.msra.mxu0 %v18_v5 }
  0x74   :  { %v13_v6 = vpop.permute.xlu0 %12 }
  0x75   :  { %v14_v7 = vmax.f32 %v11_v0, %v13_v6 }
  0x77   :  { %15 = vrot.lane.b32.xlu0 %v14_v7, %s228_s19 }
  0x82   :  { %v107_v18 = vpop.permute.xlu1 %106 }
  0xe9   :  { %v16_v8 = vpop.permute.xlu0 %15 }
  0xea   :  { %v17_v9 = vmax.f32 %v14_v7, %v16_v8 }
  0xec   :  { %211 = vmatmul.mubr.msk.f32.vlgmr.msra.gmra.mxu0 %vm29_vm1, %v17_v9 }
 0x1ac   :  { %v99_v13 = vpop.f32.mrf.mxu0 }
 0x1ad   :  { %v100_v14 = vadd.f32 %v191_v12, %v99_v13 }
 0x1ae   :  { %v212_v15 = vpop.f32.mrf.mxu0 }
 0x1af   :  { %v103_v16 = vmax.f32 %v100_v14, 0.0 }
 0x1b1   :  { %214 = vmatpush3.xpose.msk.msra.mxu1 %vm29_vm1, %v103_v16 }
 0x1b4   :  { %216 = vmatmul.mubr.msk.f32.vlgmr.msra.gmra.mxu1 %vm29_vm1, %v23_v17 }
 0x274   :  { %v181_v19 = vpop.f32.mrf.mxu1 }
 0x275   :  { %v182_v20 = vadd.f32 %v181_v19, %v107_v18 }
 0x276   :  { %v217_v21 = vpop.f32.mrf.mxu1 }
 0x277   :  { %186 = vst.msk [vmem:[%s274_s2] sm:$0x1] %vm185_vm2, %v182_v20 }

</bundles_post_ra>
